<compile_context>
chip_gen: v7x
topology: tpu7x:2x2x1
jax: 0.10.0
libtpu: 0.0.40
codegen_flags: <defaults>
</compile_context>

<pallas_src>
import functools

import jax
import jax.numpy as jnp
from jax.experimental import pallas as pl
from jax.experimental.pallas import tpu as pltpu

BIG = 1e30    # +inf stand-in for *squared* distances (sqrt(BIG) ~ 1e15, f32-safe)
LANE = 128
KPAD = 8      # MXU contraction dim padded from 2 to a sublane multiple


def _round_up(n, m):
    return ((n + m - 1) // m) * m


def _pick_tile(n, cap, align):
    """Largest multiple of `align` that is <= cap and divides n; else n."""
    t = (min(cap, n) // align) * align
    while t >= align:
        if n % t == 0:
            return t
        t -= align
    return n


# ---------------------------------------------------------------------------
# Kernel 1: argmax over classes -> one-hot (pred and target), int8 outputs.
# ---------------------------------------------------------------------------
def _argmax_onehot_kernel(x_ref, t_ref, pred_ref, tgt_ref):
    x = x_ref[0]                      # (C, T) f32 logits
    t = t_ref[0]                      # (1, T) int32 labels
    C = x.shape[0]
    class_ids = jax.lax.broadcasted_iota(jnp.int32, x.shape, 0)
    m = jnp.max(x, axis=0, keepdims=True)
    cand = jnp.where(x >= m, class_ids, jnp.int32(C))
    am = jnp.min(cand, axis=0, keepdims=True)        # first index of the max
    pred_ref[0] = (class_ids == am).astype(jnp.int8)
    tgt_ref[0] = (class_ids == t).astype(jnp.int8)


def _onehot_masks(logits, target):
    B, C, H, W = logits.shape
    HW = H * W
    x = logits.reshape(B, C, HW).astype(jnp.float32)
    t = target.reshape(B, 1, HW).astype(jnp.int32)

    T = _pick_tile(HW, cap=16384, align=LANE)        # tile the pixel axis
    grid = (B, HW // T)

    pred_oh, tgt_oh = pl.pallas_call(
        _argmax_onehot_kernel,
        out_shape=(jax.ShapeDtypeStruct((B, C, HW), jnp.int8),
                   jax.ShapeDtypeStruct((B, C, HW), jnp.int8)),
        grid=grid,
        in_specs=[pl.BlockSpec((1, C, T), lambda b, i: (b, 0, i)),
                  pl.BlockSpec((1, 1, T), lambda b, i: (b, 0, i))],
        out_specs=[pl.BlockSpec((1, C, T), lambda b, i: (b, 0, i)),
                   pl.BlockSpec((1, C, T), lambda b, i: (b, 0, i))],
        compiler_params=pltpu.CompilerParams(
            dimension_semantics=("parallel", "parallel")),
    )(x, t)
    return pred_oh.reshape(B, C, H, W), tgt_oh.reshape(B, C, H, W)


# ---------------------------------------------------------------------------
# Kernel 2: directed min squared distances.
#   grid = (instance, query-chunk, source-chunk); source chunk is the
#   reduction axis ("arbitrary", innermost) with running mins accumulated in
#   the resident (1, tq, 1) output block; sqrt only at finalize.
#   Per-chunk skip flags come in via scalar prefetch; coordinates/norms are
#   precomputed; the cross term runs on the MXU; masks are resident per
#   instance and sliced in-kernel.
# ---------------------------------------------------------------------------
def _dist_kernel(fp_ref, ft_ref,                       # SMEM scalar-prefetch flags
                 qc_ref, qn_ref, sc2_ref, sn_ref,      # coords / norms (invariant)
                 pb_ref, tb_ref,                       # resident per-instance masks
                 d2p_ref, d2t_ref):                    # (1, tq, 1) accumulators
    ni = pl.program_id(0)
    si = pl.program_id(2)

    @pl.when(si == 0)
    def _init():
        init = jnp.full(d2p_ref.shape, BIG, jnp.float32)
        d2p_ref[...] = init
        d2t_ref[...] = init

    fp = fp_ref[ni, si]
    ft = ft_ref[ni, si]

    @pl.when(fp + ft > 0)
    def _compute():
        # d2 = |q|^2 + |s|^2 - 2 q.s ; cross term on the (otherwise idle) MXU.
        # HIGHEST precision keeps f32 integer coordinates exact (no bf16 drop).
        cross2 = jnp.dot(qc_ref[...], sc2_ref[...],
                         preferred_element_type=jnp.float32,
                         precision=jax.lax.Precision.HIGHEST)    # (tq, ts)
        d2 = qn_ref[...] + (sn_ref[...] - cross2)                # (tq,1)+(1,ts)-(tq,ts)
        big = jnp.float32(BIG)

        @pl.when(fp > 0)
        def _():
            pbm = pb_ref[0, pl.ds(si, 1), :] != 0                # (1, ts)
            d2p_ref[0] = jnp.minimum(
                d2p_ref[0],
                jnp.min(jnp.where(pbm, d2, big), axis=1, keepdims=True))

        @pl.when(ft > 0)
        def _():
            tbm = tb_ref[0, pl.ds(si, 1), :] != 0                # (1, ts)
            d2t_ref[0] = jnp.minimum(
                d2t_ref[0],
                jnp.min(jnp.where(tbm, d2, big), axis=1, keepdims=True))

    @pl.when(si == pl.num_programs(2) - 1)
    def _finalize():
        # clamp: the |q|^2+|s|^2-2q.s form can round slightly negative at q==s
        d2p_ref[...] = jnp.sqrt(jnp.maximum(d2p_ref[...], 0.0))
        d2t_ref[...] = jnp.sqrt(jnp.maximum(d2t_ref[...], 0.0))


def _directed_min_distances(pb, tb, H, W, sy, sx):
    """Per instance: for every pixel, the distance (mm) to the nearest
    pred-boundary pixel and to the nearest target-boundary pixel.
    pb, tb: (NI, N) int8 boundary masks, N = H*W."""
    NI, N = pb.shape
    npad = _round_up(N, LANE)
    ts = _pick_tile(npad, cap=1024, align=LANE)       # source-chunk width (lanes)
    tq = _pick_tile(npad, cap=256, align=8)           # query-chunk height (sublanes)
    n_si = npad // ts
    n_qi = npad // tq
    pad = npad - N

    # resident per-instance boundary masks, chunked along sublanes for cheap
    # in-kernel dynamic slicing: (NI, n_si, ts) int32
    pb_i = jnp.pad(pb.astype(jnp.int32), ((0, 0), (0, pad))).reshape(NI, n_si, ts)
    tb_i = jnp.pad(tb.astype(jnp.int32), ((0, 0), (0, pad))).reshape(NI, n_si, ts)

    # per-(instance, source-chunk) skip flags -> SMEM via scalar prefetch
    flag_p = (jnp.max(pb_i, axis=-1) > 0).astype(jnp.int32)      # (NI, n_si)
    flag_t = (jnp.max(tb_i, axis=-1) > 0).astype(jnp.int32)

    # exact integer pixel coordinates (centered to reduce cancellation),
    # scaled to mm; padded pixels get harmless finite coords (masked out).
    idx = jnp.arange(npad, dtype=jnp.int32)
    yc = (idx // W - H // 2).astype(jnp.float32) * jnp.float32(sy)
    xc = (idx % W - W // 2).astype(jnp.float32) * jnp.float32(sx)
    n2 = yc * yc + xc * xc
    qc = jnp.zeros((npad, KPAD), jnp.float32).at[:, 0].set(yc).at[:, 1].set(xc)
    sc2 = jnp.zeros((KPAD, npad), jnp.float32).at[0].set(2.0 * yc).at[1].set(2.0 * xc)
    qn = n2.reshape(npad, 1)
    sn = n2.reshape(1, npad)

    grid = (NI, n_qi, n_si)
    gs = pltpu.PrefetchScalarGridSpec(
        num_scalar_prefetch=2,
        grid=grid,
        in_specs=[
            pl.BlockSpec((tq, KPAD), lambda ni, qi, si, *_: (qi, 0)),     # Q
            pl.BlockSpec((tq, 1), lambda ni, qi, si, *_: (qi, 0)),        # |q|^2
            pl.BlockSpec((KPAD, ts), lambda ni, qi, si, *_: (0, si)),     # 2 S^T
            pl.BlockSpec((1, ts), lambda ni, qi, si, *_: (0, si)),        # |s|^2
            pl.BlockSpec((1, n_si, ts), lambda ni, qi, si, *_: (ni, 0, 0)),  # pred mask (resident)
            pl.BlockSpec((1, n_si, ts), lambda ni, qi, si, *_: (ni, 0, 0)),  # tgt mask (resident)
        ],
        out_specs=[
            pl.BlockSpec((1, tq, 1), lambda ni, qi, si, *_: (ni, qi, 0)),
            pl.BlockSpec((1, tq, 1), lambda ni, qi, si, *_: (ni, qi, 0)),
        ],
    )

    d2p, d2t = pl.pallas_call(
        _dist_kernel,
        out_shape=(jax.ShapeDtypeStruct((NI, npad, 1), jnp.float32),
                   jax.ShapeDtypeStruct((NI, npad, 1), jnp.float32)),
        grid_spec=gs,
        compiler_params=pltpu.CompilerParams(
            dimension_semantics=("parallel", "parallel", "arbitrary"),
            vmem_limit_bytes=32 * 1024 * 1024),
    )(flag_p, flag_t, qc, qn, sc2, sn, pb_i, tb_i)
    return d2p.reshape(NI, npad)[:, :N], d2t.reshape(NI, npad)[:, :N]


# ---------------------------------------------------------------------------
# Plain-JAX glue
# ---------------------------------------------------------------------------
def _boundary(mask):
    # foreground pixel with at least one 4-neighbour (or image border) that is
    # background -> boundary pixel.  mask: (B, C, H, W) int8 in {0, 1}.
    pad = jnp.pad(mask, ((0, 0), (0, 0), (1, 1), (1, 1)))
    up = pad[:, :, :-2, 1:-1]
    down = pad[:, :, 2:, 1:-1]
    left = pad[:, :, 1:-1, :-2]
    right = pad[:, :, 1:-1, 2:]
    nmin = jnp.minimum(jnp.minimum(up, down), jnp.minimum(left, right))
    return mask * (nmin == 0).astype(mask.dtype)


def _directed_hd(dist, mask, frac=0.95):
    """HD100 (masked max, no sort) and HD-frac (sorted unweighted percentile)
    of `dist` over pixels with mask > 0.  dist, mask: (NI, N)."""
    valid = mask > 0
    m = jnp.sum(valid, axis=-1).astype(jnp.int32)                 # boundary counts
    d100 = jnp.max(jnp.where(valid, dist, -jnp.inf), axis=-1)
    s = jnp.sort(jnp.where(valid, dist, jnp.inf), axis=-1)
    k = jnp.clip(jnp.ceil(frac * m.astype(jnp.float32)).astype(jnp.int32) - 1,
                 0, dist.shape[-1] - 1)
    dfrac = jnp.take_along_axis(s, k[:, None], axis=-1)[:, 0]
    d100 = jnp.where(m > 0, d100, jnp.inf)
    dfrac = jnp.where(m > 0, dfrac, jnp.inf)
    return d100, dfrac


def hd_metric(logits, target, spacing_mm=(1.0, 1.0, 1.0),
              include_background=False, average="micro", softmax=True):
    del softmax  # argmax(softmax(x)) == argmax(x): softmax elided (identical result)
    B, C, H, W = logits.shape
    pred_oh, tgt_oh = _onehot_masks(logits, target)
    if not include_background:
        pred_oh = pred_oh[:, 1:]
        tgt_oh = tgt_oh[:, 1:]
    Cf = pred_oh.shape[1]

    pb = _boundary(pred_oh)              # (B, Cf, H, W) int8
    tb = _boundary(tgt_oh)

    N = H * W
    NI = B * Cf
    # class-major, batch-minor instance ordering (matches the PyTorch loop)
    pb = jnp.transpose(pb, (1, 0, 2, 3)).reshape(NI, N)
    tb = jnp.transpose(tb, (1, 0, 2, 3)).reshape(NI, N)

    sy, sx = float(spacing_mm[0]), float(spacing_mm[1])
    dp, dt = _directed_min_distances(pb, tb, H, W, sy, sx)

    # directed Hausdorff percentiles (small O(NI * N log N) XLA epilogue)
    p2t_100, p2t_95 = _directed_hd(dt, pb)   # pred -> tgt (at pred boundary)
    t2p_100, t2p_95 = _directed_hd(dp, tb)   # tgt  -> pred (at tgt boundary)
    hd100 = jnp.maximum(p2t_100, t2p_100)
    hd95 = jnp.maximum(p2t_95, t2p_95)

    # an empty *other*-set boundary leaves the distance at sqrt(BIG) -> inf
    # (matches compute_robust_hausdorff semantics for empty surfaces)
    thresh = jnp.float32(1e14)
    hd100 = jnp.where(hd100 >= thresh, jnp.inf, hd100)
    hd95 = jnp.where(hd95 >= thresh, jnp.inf, hd95)

    if average == "micro":
        return jnp.mean(hd100), jnp.mean(hd95)
    elif average == "macro":
        hd100_c = jnp.mean(hd100.reshape(Cf, B), axis=1)
        hd95_c = jnp.mean(hd95.reshape(Cf, B), axis=1)
        return jnp.mean(hd100_c), jnp.mean(hd95_c)
    else:
        raise ValueError(f"unknown average: {average}")


if __name__ == "__main__":
    key = jax.random.PRNGKey(0)
    k1, k2 = jax.random.split(key)
    B, C, H, W = 2, 4, 16, 16
    logits = jax.random.normal(k1, (B, C, H, W), dtype=jnp.float32)
    target = jax.random.randint(k2, (B, H, W), 0, C, dtype=jnp.int32)

    hd, hd95 = hd_metric(logits, target, spacing_mm=(1.0, 1.0, 1.0),
                         include_background=False, average="micro")
    hd = jax.block_until_ready(hd)
    hd95 = jax.block_until_ready(hd95)
    # module returns python floats via .item(); mirror that
    _hd_val, _hd95_val = float(hd), float(hd95)
    print("KERNEL_OK")
</pallas_src>

<mosaic_0001>
module attributes {stable_mosaic.version = 11 : i64} {
  func.func @_argmax_onehot_kernel(%arg0: i32, %arg1: i32, %arg2: memref<1x4x256xf32, #tpu.memory_space<vmem>>, %arg3: memref<1x1x256xi32, #tpu.memory_space<vmem>>, %arg4: memref<1x4x256xi8, #tpu.memory_space<vmem>>, %arg5: memref<1x4x256xi8, #tpu.memory_space<vmem>>) attributes {dimension_semantics = [#tpu.dimension_semantics<parallel>, #tpu.dimension_semantics<parallel>], iteration_bounds = array<i64: 2, 1>, scalar_prefetch = 0 : i64, scratch_operands = 0 : i64, tpu.core_type = #tpu.core_type<tc>, window_params = [{transform_indices = @transform_0, window_bounds = array<i64: 1, 4, 256>}, {transform_indices = @transform_1, window_bounds = array<i64: 1, 1, 256>}, {transform_indices = @transform_2, window_bounds = array<i64: 1, 4, 256>}, {transform_indices = @transform_3, window_bounds = array<i64: 1, 4, 256>}]} {
    %c0 = arith.constant 0 : index
    %c0_0 = arith.constant 0 : index
    %c0_1 = arith.constant 0 : index
    %0 = vector.load %arg2[%c0, %c0_0, %c0_1] : memref<1x4x256xf32, #tpu.memory_space<vmem>>, vector<1x4x256xf32>
    %1 = vector.shape_cast %0 : vector<1x4x256xf32> to vector<4x256xf32>
    %c0_2 = arith.constant 0 : index
    %c0_3 = arith.constant 0 : index
    %c0_4 = arith.constant 0 : index
    %2 = vector.load %arg3[%c0_2, %c0_3, %c0_4] : memref<1x1x256xi32, #tpu.memory_space<vmem>>, vector<1x1x256xi32>
    %3 = vector.shape_cast %2 : vector<1x1x256xi32> to vector<1x256xi32>
    %4 = tpu.iota {dimensions = array<i32: 0>} : vector<4x256xi32>
    %cst = arith.constant dense<0xFF800000> : vector<256xf32>
    %5 = vector.multi_reduction <maximumf>, %1, %cst [0] : vector<4x256xf32> to vector<256xf32>
    %6 = vector.shape_cast %5 : vector<256xf32> to vector<1x256xf32>
    %7 = vector.broadcast %6 : vector<1x256xf32> to vector<4x256xf32>
    %8 = arith.cmpf oge, %1, %7 : vector<4x256xf32>
    %c4_i32 = arith.constant 4 : i32
    %9 = vector.broadcast %c4_i32 : i32 to vector<4x256xi32>
    %10 = arith.select %8, %4, %9 : vector<4x256xi1>, vector<4x256xi32>
    %cst_5 = arith.constant dense<2147483647> : vector<256xi32>
    %11 = vector.multi_reduction <minsi>, %10, %cst_5 [0] : vector<4x256xi32> to vector<256xi32>
    %12 = vector.shape_cast %11 : vector<256xi32> to vector<1x256xi32>
    %13 = vector.broadcast %12 : vector<1x256xi32> to vector<4x256xi32>
    %14 = arith.cmpi eq, %4, %13 : vector<4x256xi32>
    %15 = arith.extui %14 : vector<4x256xi1> to vector<4x256xi8>
    %c0_6 = arith.constant 0 : index
    %c0_7 = arith.constant 0 : index
    %c0_8 = arith.constant 0 : index
    %16 = vector.load %arg4[%c0_6, %c0_7, %c0_8] : memref<1x4x256xi8, #tpu.memory_space<vmem>>, vector<1x4x256xi8>
    %17 = vector.shape_cast %16 : vector<1x4x256xi8> to vector<4x256xi8>
    %18 = vector.shape_cast %15 : vector<4x256xi8> to vector<1x4x256xi8>
    tpu.vector_store %arg4[%c0_6, %c0_7, %c0_8], %18 {strides = array<i32>} : memref<1x4x256xi8, #tpu.memory_space<vmem>>, vector<1x4x256xi8>,
    %19 = vector.broadcast %3 : vector<1x256xi32> to vector<4x256xi32>
    %20 = arith.cmpi eq, %4, %19 : vector<4x256xi32>
    %21 = arith.extui %20 : vector<4x256xi1> to vector<4x256xi8>
    %c0_9 = arith.constant 0 : index
    %c0_10 = arith.constant 0 : index
    %c0_11 = arith.constant 0 : index
    %22 = vector.load %arg5[%c0_9, %c0_10, %c0_11] : memref<1x4x256xi8, #tpu.memory_space<vmem>>, vector<1x4x256xi8>
    %23 = vector.shape_cast %22 : vector<1x4x256xi8> to vector<4x256xi8>
    %24 = vector.shape_cast %21 : vector<4x256xi8> to vector<1x4x256xi8>
    tpu.vector_store %arg5[%c0_9, %c0_10, %c0_11], %24 {strides = array<i32>} : memref<1x4x256xi8, #tpu.memory_space<vmem>>, vector<1x4x256xi8>,
    return
  }
  func.func @transform_0(%arg0: i32, %arg1: i32) -> (i32, i32, i32) {
    %c0_i32 = arith.constant 0 : i32
    %c0_i32_0 = arith.constant 0 : i32
    return %arg0, %c0_i32, %arg1 : i32, i32, i32
  }
  func.func @transform_1(%arg0: i32, %arg1: i32) -> (i32, i32, i32) {
    %c0_i32 = arith.constant 0 : i32
    %c0_i32_0 = arith.constant 0 : i32
    return %arg0, %c0_i32, %arg1 : i32, i32, i32
  }
  func.func @transform_2(%arg0: i32, %arg1: i32) -> (i32, i32, i32) {
    %c0_i32 = arith.constant 0 : i32
    %c0_i32_0 = arith.constant 0 : i32
    return %arg0, %c0_i32, %arg1 : i32, i32, i32
  }
  func.func @transform_3(%arg0: i32, %arg1: i32) -> (i32, i32, i32) {
    %c0_i32 = arith.constant 0 : i32
    %c0_i32_0 = arith.constant 0 : i32
    return %arg0, %c0_i32, %arg1 : i32, i32, i32
  }
}

</mosaic_0001>

<bundles_post_ra>
// kernel: tpu_custom_call.1
= control target key start
LH: loop header
LB: loop body
LE: loop exit
PB: predicated region body
PF: predicated region fallthrough
CT: control target
= control target key end

     0   :  { %9 = vsyncpa [#allocation3], 0  ;;  %s1155_s0 = inlined_call_operand.hbm [shape: f32[2,4,256], index: 0, kind: input, shape index: {}]   ;;  %s1156_s1 = inlined_call_operand.hbm [shape: s32[2,1,256], index: 1, kind: input, shape index: {}]   ;;  %s1157_s2 = inlined_call_operand.hbm [shape: s8[2,4,256], index: 2, kind: output, shape index: {0}]   ;;  %s1158_s3 = inlined_call_operand.hbm [shape: s8[2,4,256], index: 3, kind: output, shape index: {1}]  }
   0x1   :  { %11 = vsyncpa [#allocation3 + $0x1], 0 }
   0x2   :  { %12 = vsyncpa [#allocation6], 0 }
   0x3   :  { %14 = vsyncpa [#allocation6 + $0x1], 0 }
   0x4   :  { %15 = vsyncpa [#allocation4], 0 }
   0x5   :  { %17 = vsyncpa [#allocation4 + $0x1], 0 }
   0x6   :  { %18 = vsyncpa [#allocation9], 0 }
   0x7   :  { %20 = vsyncpa [#allocation9 + $0x1], 0  ;;  %s873_s12 = smov 0   ;;  %s875_s13 = smov 0  }
   0x8   :  { %s877_s14 = smov 0   ;;  %s879_s15 = smov 0  }
   0x9   :  { %s881_s16 = smov 0   ;;  %s883_s17 = smov 0  }
   0xa LB: > { %s561_s18 = sadd.s32 4294967295, %s844_s17   ;;  %s562_s19 = sadd.s32 4294967294, %s844_s17   ;;  %s844_s17 = sphi %s883_s17, %s26_s17   ;;  %s840_s16 = sphi %s881_s16, %s1178_s16   ;;  %s836_s15 = sphi %s879_s15, %s1177_s15   ;;  %s832_s14 = sphi %s877_s14, %s1176_s14   ;;  %s828_s13 = sphi %s875_s13, %s1175_s13   ;;  %s824_s12 = sphi %s873_s12, %s1174_s12  }
   0xb   : > { %s38_s20 = sadd.s32 1, %s840_s16  ;;  %s47_s21 = sadd.s32 1, %s832_s14 }
   0xc   : > { %p40_p0 = scmp.ge.s32.totalorder %s38_s20, 2  ;;  %p54_p1 = scmp.ne.s32.totalorder %s832_s14, %s828_s13 }
   0xd   : > { %p55_p2 = scmp.eq.s32.totalorder %s844_s17, 0  ;;  %p60_p3 = scmp.ne.s32.totalorder %s828_s13, %s824_s12 }
   0xe   : > { %s1180_s20 = smov (%p40_p0, %s38_s20), 0  ;;  %p61_p5 = scmp.eq.s32.totalorder %s561_s18, 0 }
   0xf   : > { %p914_p4 = por %p55_p2, %p54_p1  ;;  %s42_s23 = ssub.s32 %s840_s16, %s1180_s20 }
  0x10   : > { %p114_p6 = scmp.eq.s32.totalorder %s561_s18, 1  ;;  %p45_p7 = scmp.eq.s32.totalorder %s42_s23, 0 }
  0x11   : > { %p920_p8 = por %p61_p5, %p60_p3  ;;  %p120_p10 = scmp.eq.s32.totalorder %s562_s19, 1 }
  0x12   : > { %p924_p9 = por %p114_p6, %p54_p1  ;;  %p612_p13 = scmp.lt.s32.totalorder %s844_s17, 2 }
  0x13   : > { %s1162_s24 = scalar_select %p920_p8, 1, 0 }
  0x14   : > { %s1163_s25 = scalar_select %p924_p9, 1, 0 }
  0x15   : > { %s929_s26 = scalar_select %p45_p7, %s832_s14, %s47_s21  }
  0x16   : > { %p931_p11 = por %p120_p10, %p60_p3  ;;  %s938_s28 = sand.u32 1, %s832_s14  }
  0x17   : > { %s565_s29 = sshll.u32 %s938_s28, 3  ;;  %s586_s30 = sshll.u32 %s840_s16, 7 }
  0x18   : > { %s1164_s27 = scalar_select %p931_p11, 1, 0 }
  0x19   : > { %s945_s6 = scalar_lea.hbm %s1155_s0, %s586_s30  ;;  %s172_s7 = scalar_lea.vmem [#allocation2], %s565_s29 }
  0x1a   : > { %s182_s8 = sshll.u32 %s172_s7, 4  ;;  %p951_p0 = pnand %p612_p13, %p914_p4  ;;  %s947_s8 = int_to_ptr.vmem [resolvable:$true] %s182_s8 }
  0x1b   : > { %s169_s10 = scalar_lea.sflag [#allocation3], %s938_s28  ;;  %s666_s11 = scalar_lea.hbm %s945_s6, 128 }
  0x1c   : > { %p667_p3 = scmp.ne.s32.totalorder %s945_s6, %s666_s11  ;;  %p668_p5 = pneg %p951_p0 }
  0x1d   : > { %s671_s21 = scalar_lea.hbm %s1155_s0, 256  ;;  %p672_p4 = scmp.lt.u32.totalorder %s945_s6, %s1155_s0 }
  0x1e   : > { %p669_p6 = pnand %p668_p5, %p667_p3  ;;  %p673_p10 = scmp.lt.u32.totalorder %s671_s21, %s666_s11 }
  0x1f   : > { %p675_p12 = scmp.lt.u32.totalorder %s666_s11, %s945_s6 }
  0x20   : > { %p670_p7 = pneg %p669_p6  ;;  %p674_p13 = por %p673_p10, %p672_p4 }
  0x22   : > { %p676_p1 = por %p675_p12, %p674_p13 }
  0x24   : > { %p677_p2 = pnand %p676_p1, %p670_p7 }
  0x26   : > { %680 = shalt.err (!%p677_p2)
}
  0x27   : > { %s681_s29 = scalar_lea.vmem %s947_s8, 128  ;;  %s846_s30 = smov [#allocation2]  }
  0x28   : > { %p682_p3 = scmp.ne.s32.totalorder %s947_s8, %s681_s29  ;;  %s686_s4 = sshll.u32 %s846_s30, 4  ;;  %s687_s4 = int_to_ptr.vmem [resolvable:$false] %s686_s4 }
  0x29   : > { %s688_s5 = scalar_lea.vmem %s687_s4, 256  ;;  %p689_p9 = scmp.lt.s32.totalorder %s947_s8, %s687_s4 }
  0x2a   : > { %p684_p6 = pnand %p682_p3, %p668_p5  ;;  %p690_p4 = scmp.lt.s32.totalorder %s688_s5, %s681_s29 }
  0x2c   : > { %p685_p11 = pneg %p684_p6  ;;  %p691_p10 = por %p690_p4, %p689_p9 }
  0x2e   : > { %p692_p12 = pnand %p691_p10, %p685_p11 }
  0x30   : > { %695 = shalt.err (!%p692_p12)
}
  0x31   : > { %601 = dma.hbm_to_vmem [thread:$0]  (!%p951_p0), %s945_s6, 128, %s947_s8, %s169_s10  }
  0x32   : > { %p1166_p1 = scmp.lt.s32.totalorder %s844_s17, 3  ;;  %p1167_p2 = scmp.ge.s32.totalorder %s844_s17, 1 }
  0x33   : > { %s568_s11 = sshll.u32 %s938_s28, 1  ;;  %s587_s18 = sshll.u32 %s840_s16, 5 }
  0x34   : > { %p987_p7 = pnand %p1167_p2, %p1166_p1  ;;  %s996_s22 = scalar_lea.hbm %s1156_s1, %s587_s18 }
  0x35   : > { %s193_s23 = scalar_lea.vmem [#allocation5], %s568_s11  ;;  %s190_s6 = scalar_lea.sflag [#allocation6], %s938_s28 }
  0x36   : > { %s1168_s7 = scalar_select %p987_p7, 1, 0 }
  0x37   : > { %s203_s29 = sshll.u32 %s193_s23, 4  ;;  %s696_s8 = scalar_lea.hbm %s996_s22, 32  ;;  %s204_s29 = int_to_ptr.vmem [resolvable:$true] %s203_s29 }
  0x38   : > { %p697_p9 = scmp.ne.s32.totalorder %s996_s22, %s696_s8  ;;  %s701_s4 = scalar_lea.hbm %s1156_s1, 64 }
  0x39   : > { %p702_p3 = scmp.lt.u32.totalorder %s996_s22, %s1156_s1  ;;  %p703_p6 = scmp.lt.u32.totalorder %s701_s4, %s696_s8 }
  0x3a   : > { %p699_p11 = pnand %p697_p9, %p668_p5  ;;  %p705_p10 = scmp.lt.u32.totalorder %s696_s8, %s996_s22 }
  0x3b   : > { %p704_p4 = por %p703_p6, %p702_p3 }
  0x3c   : > { %p700_p13 = pneg %p699_p11 }
  0x3d   : > { %p706_p12 = por %p705_p10, %p704_p4 }
  0x3f   : > { %p707_p1 = pnand %p706_p12, %p700_p13 }
  0x41   : > { %710 = shalt.err (!%p707_p1)
}
  0x42   : > { %s711_s28 = scalar_lea.vmem %s204_s29, 32  ;;  %s847_s11 = smov [#allocation5]  }
  0x43   : > { %p712_p2 = scmp.ne.s32.totalorder %s204_s29, %s711_s28  ;;  %s716_s19 = sshll.u32 %s847_s11, 4  ;;  %s717_s19 = int_to_ptr.vmem [resolvable:$false] %s716_s19 }
  0x44   : > { %s718_s21 = scalar_lea.vmem %s717_s19, 64  ;;  %p719_p8 = scmp.lt.s32.totalorder %s204_s29, %s717_s19 }
  0x45   : > { %p714_p9 = pnand %p712_p2, %p668_p5  ;;  %p720_p7 = scmp.lt.s32.totalorder %s718_s21, %s711_s28 }
  0x47   : > { %p715_p11 = pneg %p714_p9  ;;  %p721_p3 = por %p720_p7, %p719_p8 }
  0x49   : > { %p722_p6 = pnand %p721_p3, %p715_p11 }
  0x4b   : > { %725 = shalt.err (!%p722_p6)
}
  0x4c   : > { %604 = dma.hbm_to_vmem [thread:$0]  (!%p951_p0), %s996_s22, 32, %s204_s29, %s190_s6  }
  0x4d   : > { %p1169_p13 = scmp.ne.s32.totalorder %s1168_s7, 0 }
  0x4e   : > { %s1021_s23 = sand.u32 (!%p1169_p13), 1, %s828_s13   ;;  %p1170_p5 = scmp.ne.s32.totalorder (!%p1169_p13), %s1162_s24, 0 }
  0x4f   : > { %212 = sbr.rel (%p1169_p13) target bundleno = 162 (0xa2), region = 28  ;;  %s572_s8 = sshll.u32 (!%p1169_p13), %s1021_s23, 3 }
  0x50   : > { %s215_s10 = scalar_lea.sflag (!%p1169_p13), [#allocation3], %s1021_s23  ;;  %s218_s30 = scalar_lea.vmem (!%p1169_p13), [#allocation2], %s572_s8 }
  0x56   : > { %807 = dma.done.wait (%p1170_p5), %s215_s10, 128  }
  0x57   : > { %809 = vsyncadd (%p1170_p5), %s215_s10, 4294967168  ;;  %s1030_s9 = sshll.u32 %s1021_s23, 1  ;;  %s224_s7 = scalar_lea.sflag [#allocation6], %s1021_s23 }
  0x58   : > { %s227_s22 = scalar_lea.vmem [#allocation5], %s1030_s9 }
  0x59   : > { %811 = dma.done.wait (%p1170_p5), %s224_s7, 32  }
  0x5a   : > { %813 = vsyncadd (%p1170_p5), %s224_s7, 4294967264  ;;  %v268_v0 = vlaneseq  ;;  %vm273_vm0 = vcmask 1043456   ;;  %v848_v4 = vmov 1966171168   ;;  %v1042_v6 = vld [vmem:[%s218_s30] sm:$0xff]  ;;  %v850_v21 = vmov 0  }
  0x5b   : > { %v332_v5 = vunpack.c.l.s4 %v848_v4  ;;  %v267_v7 = vld [vmem:[%s227_s22] sm:$0x3]  ;;  %v271_v8 = vcombine.high %v1042_v6, %v1042_v6  ;;  %v274_v9 = vsel %vm273_vm0, %v1042_v6, -inf  ;;  %v849_v13 = vmov 839922192   ;;  %s259_s24 = scalar_lea.vmem [#allocation8], %s1030_s9 }
  0x5c   : > { %v1038_v1 = vshrl.u32 %v268_v0, 7  ;;  %v275_v12 = vrot.slane %v274_v9, 4  ;;  %v294_v14 = vunpack.c.l.s4 %v849_v13  ;;  %s416_s29 = sshll.u32 %s259_s24, 4  ;;  %s588_s6 = sshll.u32 %s836_s15, 5  ;;  %s1058_s29 = int_to_ptr.vmem [resolvable:$true] %s416_s29 }
  0x5d   : > { %v281_v15 = vsel %vm273_vm0, %v271_v8, -inf  ;;  %v333_v16 = vunpack.c.0.s8 %v332_v5  ;;  %s1067_s18 = scalar_lea.hbm %s1158_s3, %s588_s6  ;;  %s384_s28 = scalar_lea.sflag [#allocation9], %s1021_s23 }
  0x5e   : > { %v348_v2 = vsub.s32 0, %v1038_v1  ;;  %v352_v3 = vsub.s32 1, %v1038_v1  ;;  %v276_v17 = vmax.f32 %v274_v9, %v275_v12  ;;  %v282_v18 = vrot.slane %v281_v15, 4  ;;  %s726_s11 = scalar_lea.vmem %s1058_s29, 32  ;;  %p1171_p0 = scmp.ne.s32.totalorder %s1163_s25, 0 }
  0x5f   : > { %v295_v23 = vunpack.c.0.s8 %v294_v14  ;;  %v1053_v24 = vsub.s32 %v333_v16, %v1038_v1  ;;  %p727_p8 = scmp.ne.s32.totalorder %s1058_s29, %s726_s11  ;;  %s851_s19 = smov [#allocation8]  }
  0x60   : > { %v349_v10 = vrot.slane %v267_v7, %v348_v2  ;;  %v353_v11 = vrot.slane %v267_v7, %v352_v3  ;;  %v277_v19 = vrot.slane %v276_v17, 2  ;;  %v283_v20 = vmax.f32 %v281_v15, %v282_v18  ;;  %s730_s21 = sshll.u32 %s851_s19, 4  ;;  %s731_s21 = int_to_ptr.vmem [resolvable:$false] %s730_s21 }
  0x61   : > { %v298_v31 = vsub.s32 %v295_v23, %v1038_v1  ;;  %p728_p7 = pnand %p727_p8, %p1171_p0  ;;  %s732_s8 = scalar_lea.vmem %s731_s21, 64 }
  0x62   : > { %vm354_vm1 = vcmp.eq.s32.totalorder %v1038_v1, %v349_v10  ;;  %vm355_vm2 = vcmp.eq.s32.totalorder %v1038_v1, %v353_v11  ;;  %v278_v25 = vmax.f32 %v276_v17, %v277_v19  ;;  %v284_v26 = vrot.slane %v283_v20, 2  ;;  %p733_p10 = scmp.lt.s32.totalorder %s1058_s29, %s731_s21  ;;  %p734_p12 = scmp.lt.s32.totalorder %s732_s8, %s726_s11 }
  0x63   : > { %vm356_vm3 = vmpackc.low %vm354_vm1, %vm354_vm1  ;;  %p729_p4 = pneg %p728_p7 }
  0x64   : > { %vm357_vm4 = vmpackc.even %vm356_vm3, %vm356_vm3  ;;  %v279_v29 = vrot.slane %v278_v25, 1  ;;  %v285_v30 = vmax.f32 %v283_v20, %v284_v26  ;;  %p735_p1 = por %p734_p12, %p733_p10 }
  0x65   : > { %vm358_vm5 = vmpackc.low %vm355_vm2, %vm355_vm2  ;;  %v360_v22 = vsel %vm357_vm4, 16843009, %v850_v21 }
  0x66   : > { %vm359_vm6 = vmpackc.even %vm358_vm5, %vm358_vm5  ;;  %v280_v33 = vmax.f32 %v278_v25, %v279_v29  ;;  %v286_v34 = vrot.slane %v285_v30, 1  ;;  %p736_p2 = pnand %p735_p1, %p729_p4 }
  0x67   : > { %v361_v27 = vsel %vm359_vm6, 16843009, %v850_v21 }
  0x68   : > { %v362_v28 = vcombine.low %v360_v22, %v361_v27  ;;  %v287_v35 = vmax.f32 %v285_v30, %v286_v34 }
  0x6a   : > { %v369_v32 = vrot.slane %v362_v28, %v1053_v24 }
  0x6c   : > { %577 = vst.sshfl [vmem:[%s259_s24] sm:$0x5 pattern:$0x73625140] %v369_v32 }
  0x6d   : > { %739 = shalt.err (!%p736_p2)
}
  0x6e   : > { %s740_s10 = scalar_lea.hbm %s1067_s18, 32  ;;  %s744_s22 = scalar_lea.hbm %s1158_s3, 64 }
  0x6f   : > { %p741_p9 = scmp.ne.s32.totalorder %s1067_s18, %s740_s10  ;;  %p745_p6 = scmp.lt.u32.totalorder %s1067_s18, %s1158_s3 }
  0x70   : > { %p746_p13 = scmp.lt.u32.totalorder %s744_s22, %s740_s10  ;;  %p748_p8 = scmp.lt.u32.totalorder %s740_s10, %s1067_s18 }
  0x71   : > { %p742_p11 = pnand %p741_p9, %p1171_p0 }
  0x72   : > { %p747_p5 = por %p746_p13, %p745_p6 }
  0x73   : > { %p743_p3 = pneg %p742_p11 }
  0x74   : > { %p749_p7 = por %p748_p8, %p747_p5 }
  0x76   : > { %p750_p4 = pnand %p749_p7, %p743_p3 }
  0x78   : > { %753 = shalt.err (!%p750_p4)
}
  0x79   : > { %595 = dma.vmem_to_hbm [thread:$0]  (%p1171_p0), %s1058_s29, 32, %s1067_s18, %s384_s28   ;;  %v299_v36 = vrot.slane %v1038_v1, %v298_v31  ;;  %v290_v37 = vcombine.low %v280_v33, %v287_v35 }
  0x7a   : > { %s252_s29 = scalar_lea.vmem [#allocation7], %s1030_s9  ;;  %s1108_s11 = scalar_lea.hbm %s1157_s2, %s588_s6 }
  0x7b   : > { %vm292_vm7 = vcmp.ge.f32.partialorder %v1042_v6, %v290_v37  ;;  %s400_s5 = sshll.u32 %s252_s29, 4  ;;  %s379_s19 = scalar_lea.sflag [#allocation4], %s1021_s23  ;;  %s1100_s5 = int_to_ptr.vmem [resolvable:$true] %s400_s5 }
  0x7c   : > { %v300_v38 = vsel %vm292_vm7, %v299_v36, 4  ;;  %s754_s9 = scalar_lea.vmem %s1100_s5, 32  ;;  %s852_s21 = smov [#allocation7]  }
  0x7d   : > { %v301_v39 = vcombine.high %v300_v38, %v300_v38  ;;  %v302_v40 = vsel %vm273_vm0, %v300_v38, 2147483647  ;;  %p755_p10 = scmp.ne.s32.totalorder %s1100_s5, %s754_s9  ;;  %s758_s8 = sshll.u32 %s852_s21, 4  ;;  %s759_s8 = int_to_ptr.vmem [resolvable:$false] %s758_s8 }
  0x7e   : > { %v303_v41 = vrot.slane %v302_v40, 4  ;;  %s760_s10 = scalar_lea.vmem %s759_s8, 64  ;;  %p761_p2 = scmp.lt.s32.totalorder %s1100_s5, %s759_s8 }
  0x7f   : > { %v312_v42 = vsel %vm273_vm0, %v301_v39, 2147483647  ;;  %p756_p12 = pnand %p755_p10, %p1171_p0  ;;  %p762_p9 = scmp.lt.s32.totalorder %s760_s10, %s754_s9 }
  0x80   : > { %vm304_vm8 = vcmp.lt.s32.totalorder %v302_v40, %v303_v41  ;;  %v313_v43 = vrot.slane %v312_v42, 4 }
  0x81   : > { %v305_v44 = vsel %vm304_vm8, %v302_v40, %v303_v41  ;;  %p757_p1 = pneg %p756_p12  ;;  %p763_p11 = por %p762_p9, %p761_p2 }
  0x82   : > { %v306_v45 = vrot.slane %v305_v44, 2  ;;  %vm314_vm9 = vcmp.lt.s32.totalorder %v312_v42, %v313_v43 }
  0x83   : > { %v315_v46 = vsel %vm314_vm9, %v312_v42, %v313_v43  ;;  %p764_p3 = pnand %p763_p11, %p757_p1 }
  0x84   : > { %vm307_vm10 = vcmp.lt.s32.totalorder %v305_v44, %v306_v45  ;;  %v316_v47 = vrot.slane %v315_v46, 2 }
  0x85   : > { %v308_v48 = vsel %vm307_vm10, %v305_v44, %v306_v45 }
  0x86   : > { %v309_v49 = vrot.slane %v308_v48, 1  ;;  %vm317_vm11 = vcmp.lt.s32.totalorder %v315_v46, %v316_v47 }
  0x87   : > { %v318_v50 = vsel %vm317_vm11, %v315_v46, %v316_v47 }
  0x88   : > { %vm310_vm12 = vcmp.lt.s32.totalorder %v308_v48, %v309_v49  ;;  %v319_v51 = vrot.slane %v318_v50, 1 }
  0x89   : > { %v311_v52 = vsel %vm310_vm12, %v308_v48, %v309_v49 }
  0x8a   : > { %vm320_vm13 = vcmp.lt.s32.totalorder %v318_v50, %v319_v51  ;;  %vm322_vm14 = vcmp.eq.s32.totalorder %v1038_v1, %v311_v52 }
  0x8b   : > { %v321_v53 = vsel %vm320_vm13, %v318_v50, %v319_v51  ;;  %vm324_vm15 = vmpackc.low %vm322_vm14, %vm322_vm14 }
  0x8c   : > { %vm323_vm0 = vcmp.eq.s32.totalorder %v1038_v1, %v321_v53  ;;  %vm325_vm1 = vmpackc.even %vm324_vm15, %vm324_vm15 }
  0x8d   : > { %vm326_vm2 = vmpackc.low %vm323_vm0, %vm323_vm0  ;;  %v328_v54 = vsel %vm325_vm1, 16843009, %v850_v21 }
  0x8e   : > { %vm327_vm3 = vmpackc.even %vm326_vm2, %vm326_vm2 }
  0x8f   : > { %v329_v55 = vsel %vm327_vm3, 16843009, %v850_v21 }
  0x90   : > { %v330_v56 = vcombine.low %v328_v54, %v329_v55 }
  0x92   : > { %v337_v57 = vrot.slane %v330_v56, %v1053_v24 }
  0x94   : > { %576 = vst.sshfl [vmem:[%s252_s29] sm:$0x5 pattern:$0x73625140] %v337_v57 }
  0x95   : > { %767 = shalt.err (!%p764_p3)
}
  0x96   : > { %s768_s15 = scalar_lea.hbm %s1108_s11, 32  ;;  %s772_s30 = scalar_lea.hbm %s1157_s2, 64 }
  0x97   : > { %p769_p6 = scmp.ne.s32.totalorder %s1108_s11, %s768_s15  ;;  %p773_p8 = scmp.lt.u32.totalorder %s1108_s11, %s1157_s2 }
  0x98   : > { %p774_p7 = scmp.lt.u32.totalorder %s772_s30, %s768_s15  ;;  %p776_p10 = scmp.lt.u32.totalorder %s768_s15, %s1108_s11 }
  0x99   : > { %p770_p13 = pnand %p769_p6, %p1171_p0 }
  0x9a   : > { %p775_p4 = por %p774_p7, %p773_p8 }
  0x9b   : > { %p771_p5 = pneg %p770_p13 }
  0x9c   : > { %p777_p12 = por %p776_p10, %p775_p4 }
  0x9e   : > { %p778_p1 = pnand %p777_p12, %p771_p5 }
  0xa0   : > { %781 = shalt.err (!%p778_p1)
}
  0xa1   : > { %594 = dma.vmem_to_hbm [thread:$0]  (%p1171_p0), %s1100_s5, 32, %s1108_s11, %s379_s19  }
  0xa2 PF: > { %s428_s24 = sand.u32 1, %s824_s12   ;;  %p1172_p2 = scmp.ne.s32.totalorder %s1164_s27, 0 }
  0xa3   : > { %p1173_p9 = scmp.ge.s32.totalorder %s844_s17, 2  ;;  %s429_s4 = scalar_lea.sflag [#allocation4], %s428_s24 }
  0xa5   : > { %p606_p11 = pnand %p1173_p9, %p1172_p2 }
  0xa7   : > { %815 = dma.done.wait (!%p606_p11), %s429_s4, 32  }
  0xa8   : > { %817 = vsyncadd (!%p606_p11), %s429_s4, 4294967264  ;;  %s438_s29 = scalar_lea.sflag [#allocation9], %s428_s24 }
  0xa9   : > { %819 = dma.done.wait (!%p606_p11), %s438_s29, 32  }
  0xaa   : > { %821 = vsyncadd (!%p606_p11), %s438_s29, 4294967264  ;;  %s26_s17 = sadd.s32 1, %s844_s17   ;;  %s1174_s12 = smov %s828_s13 }
  0xab   : > { %p23_p3 = scmp.ge.s32.totalorder %s26_s17, 4   ;;  %s1175_s13 = smov %s832_s14 }
  0xac   : > { %s1176_s14 = smov %s929_s26  ;;  %s1177_s15 = smov %s840_s16 }
  0xad   : > { %s1178_s16 = smov %s1180_s20  ;;  %25 = sbr.rel (!%p23_p3) target bundleno = 10 (0xa), region = 103 }
  0xb4   :  { %443 = vsyncpa [#allocation3], 1 }
  0xb5   :  { %445 = vsyncpa [#allocation3 + $0x1], 1 }
  0xb6   :  { %446 = vsyncpa [#allocation6], 1 }
  0xb7   :  { %448 = vsyncpa [#allocation6 + $0x1], 1 }
  0xb8   :  { %449 = vsyncpa [#allocation4], 1 }
  0xb9   :  { %451 = vsyncpa [#allocation4 + $0x1], 1 }
  0xba   :  { %452 = vsyncpa [#allocation9], 1 }
  0xbb   :  { %454 = vsyncpa [#allocation9 + $0x1], 1 }

</bundles_post_ra>
